<compile_context>
chip_gen: v6e
topology: v6e:2x2x1
jax: 0.10.0
libtpu: 0.0.40
codegen_flags: <defaults>
</compile_context>

<pallas_src>
import functools
import math

import jax
import jax.numpy as jnp
from jax.experimental import pallas as pl
from jax.experimental.pallas import tpu as pltpu


def _conv_relu_kernel(*refs, cin, kh_size, kw_size, wp, tile_cols, halo_cols,
                      guard, has_halo):
    """One grid step = one (image, output-row-band) tile.

    refs = (w_ref, b_ref, body_ref[, halo_ref], o_ref, rows_ref, col_ref)
      w_ref    : (Cout, K)              bf16, VMEM-resident (K = KH*KW*Cin)
      b_ref    : (Cout, 1)              f32,  VMEM-resident
      body_ref : (1, Cin, tile_cols)    bf16, rows [h*tile_h,(h+1)*tile_h) flattened
      halo_ref : (1, 1, Cin, halo_cols) bf16, the next KH-1 input rows
      o_ref    : (1, Cout, tile_cols)   output block (NCHW order, W-padded)
      rows_ref : (Cin, tile_cols+halo_cols+guard) VMEM scratch
      col_ref  : (K, tile_cols)         VMEM scratch (in-VMEM im2col)
    """
    if has_halo:
        w_ref, b_ref, body_ref, halo_ref, o_ref, rows_ref, col_ref = refs
    else:
        w_ref, b_ref, body_ref, o_ref, rows_ref, col_ref = refs
        halo_ref = None

    # 1) rows = [ body | halo | zero guard ] — contiguous flattened input rows.
    rows_ref[:, :tile_cols] = body_ref[0]
    if has_halo:
        rows_ref[:, tile_cols:tile_cols + halo_cols] = halo_ref[0, 0]
    rows_ref[:, tile_cols + halo_cols:] = jnp.zeros((cin, guard), rows_ref.dtype)

    # 2) in-VMEM im2col: row group (kh,kw) is `rows` shifted by kh*Wp + kw lanes.
    #    (static slices only; shifted columns beyond the valid width are junk that
    #     lands in output columns >= Wo and is sliced off in the wrapper.)
    for kh in range(kh_size):
        for kw in range(kw_size):
            t = kh * kw_size + kw
            off = kh * wp + kw
            col_ref[t * cin:(t + 1) * cin, :] = rows_ref[:, off:off + tile_cols]

    # 3) single folded-K MXU matmul (f32 accumulation) + fused bias + ReLU,
    #    lane-dense (Cout, tile_cols) store.
    acc = jnp.dot(w_ref[...], col_ref[...], preferred_element_type=jnp.float32)
    o_ref[0] = jnp.maximum(acc + b_ref[...], 0.0).astype(o_ref.dtype)


def _round_up(x, m):
    return -(-x // m) * m


def _pick_row_tile(ho, wp, cin, cout, k_dim, halo_rows, n_batch):
    """Rows per tile: tile_h*Wp a multiple of 128, VMEM <= ~10 MiB, and
    (when possible) >= ~4 total grid steps for v7x megacore / pipelining."""
    lane_unit = 128 // math.gcd(wp, 128)           # tile_h * wp % 128 == 0
    max_units = -(-ho // lane_unit)

    def vmem_bytes(tile_h):
        # accounts for (16,128)/(8,128) sublane padding of the narrow-Cin buffers
        tc = tile_h * wp
        body = 2 * _round_up(cin, 16) * tc * 2                    # dbl-buffered bf16 in
        out = 2 * _round_up(cout, 8) * tc * 4                     # dbl-buffered f32 out
        rows = _round_up(cin, 16) * (tc + halo_rows * wp + 128) * 2
        col = _round_up(k_dim, 16) * tc * 2
        accv = _round_up(cout, 8) * tc * 4                        # matmul result
        return body + out + rows + col + accv

    budget = 10 * 1024 * 1024   # safe inside v5e's 16 MiB default scoped VMEM
    tiles_per_image = max(1, -(-4 // max(1, n_batch)))
    k = max(1, -(-max_units // tiles_per_image))
    while k > 1 and vmem_bytes(k * lane_unit) > budget:
        k -= 1
    # TODO(synk): if even k == 1 exceeds the budget (very wide images), raise
    # vmem_limit_bytes per-generation or additionally tile the W axis.
    tile_h = k * lane_unit
    n_h = -(-ho // tile_h)
    return tile_h, n_h


@functools.partial(jax.jit, static_argnames=("padding",))
def basic_conv2d_relu(x_nchw, w_oihw, bias, *, padding=0):
    """Forward of BasicConv2D: relu(conv2d(x, w, b, padding)); NCHW in / NCHW out.

    stride=1, dilation=1, groups=1 only (matches the reference module).
    """
    n, cin, h, w = x_nchw.shape
    cout, cin_w, kh_size, kw_size = w_oihw.shape
    assert cin == cin_w, (cin, cin_w)
    hp0, wp = h + 2 * padding, w + 2 * padding
    ho, wo = hp0 - kh_size + 1, wp - kw_size + 1
    assert ho > 0 and wo > 0

    k_dim = kh_size * kw_size * cin
    halo_rows = kh_size - 1
    has_halo = halo_rows > 0
    tile_h, n_h = _pick_row_tile(ho, wp, cin, cout, k_dim, halo_rows, n)
    ho_pad = n_h * tile_h
    hp_pad = ho_pad + kh_size - 1
    tile_cols = tile_h * wp
    halo_cols = halo_rows * wp
    guard = 128

    # ---- thin XLA glue (one pass over the activation): cast -> pad -> flatten ----
    xp = jnp.pad(x_nchw.astype(jnp.bfloat16),
                 ((0, 0), (0, 0),
                  (padding, padding + (hp_pad - hp0)),
                  (padding, padding)))                      # (N, Cin, Hp_pad, Wp)
    x_body = xp.reshape(n, cin, hp_pad * wp)                # free reshape

    # weights (Cout, K), K ordered (kh, kw, cin) to match the im2col rows; resident.
    w_t = jnp.transpose(w_oihw, (0, 2, 3, 1)).reshape(cout, k_dim).astype(jnp.bfloat16)
    b_2d = bias.reshape(cout, 1).astype(jnp.float32)

    inputs = [w_t, b_2d, x_body]
    in_specs = [
        pl.BlockSpec((cout, k_dim), lambda i, j: (0, 0)),        # VMEM-resident
        pl.BlockSpec((cout, 1), lambda i, j: (0, 0)),            # VMEM-resident
        pl.BlockSpec((1, cin, tile_cols), lambda i, j: (i, 0, j)),
    ]
    if has_halo:
        # the KH-1 rows following each row band, gathered into a tiny side array
        # (~(KH-1)/tile_h of the input: a few % extra traffic instead of 9x im2col).
        row_idx = (jnp.arange(1, n_h + 1)[:, None] * tile_h
                   + jnp.arange(halo_rows)[None, :])             # (n_h, KH-1)
        x_halo = xp[:, :, row_idx, :]                            # (N, Cin, n_h, KH-1, Wp)
        x_halo = jnp.moveaxis(x_halo, 2, 1).reshape(n, n_h, cin, halo_cols)
        inputs.append(x_halo)
        in_specs.append(pl.BlockSpec((1, 1, cin, halo_cols), lambda i, j: (i, j, 0, 0)))

    kernel = functools.partial(
        _conv_relu_kernel, cin=cin, kh_size=kh_size, kw_size=kw_size, wp=wp,
        tile_cols=tile_cols, halo_cols=halo_cols, guard=guard, has_halo=has_halo)

    y_flat = pl.pallas_call(
        kernel,
        out_shape=jax.ShapeDtypeStruct((n, cout, ho_pad * wp), x_nchw.dtype),
        grid_spec=pltpu.PrefetchScalarGridSpec(
            num_scalar_prefetch=0,
            grid=(n, n_h),
            in_specs=in_specs,
            out_specs=pl.BlockSpec((1, cout, tile_cols), lambda i, j: (i, 0, j)),
            scratch_shapes=[
                pltpu.VMEM((cin, tile_cols + halo_cols + guard), jnp.bfloat16),
                pltpu.VMEM((k_dim, tile_cols), jnp.bfloat16),
            ]),
        compiler_params=pltpu.CompilerParams(
            dimension_semantics=("parallel", "parallel")),
    )(*inputs)

    # already NCHW / channel-major: only strip the W-side junk and bottom padding.
    return y_flat.reshape(n, cout, ho_pad, wp)[:, :, :ho, :wo]


if __name__ == "__main__":
    root = jax.random.PRNGKey(0)

    def ref_conv_relu(xv, wv, bv, pad):
        r = jax.lax.conv_general_dilated(
            xv, wv, window_strides=(1, 1), padding=((pad, pad), (pad, pad)),
            dimension_numbers=("NCHW", "OIHW", "NCHW"))
        return jnp.maximum(r + bv[None, :, None, None], 0.0)

    def run_case(key, nb, cin, hh, ww, cout, ksz, pad):
        kx, kw_, kb = jax.random.split(key, 3)
        x = jax.random.normal(kx, (nb, cin, hh, ww), jnp.float32)
        wt = jax.random.normal(kw_, (cout, cin, ksz, ksz), jnp.float32) * 0.1
        b = jax.random.normal(kb, (cout,), jnp.float32) * 0.1
        out = jax.block_until_ready(basic_conv2d_relu(x, wt, b, padding=pad))
        ref = ref_conv_relu(x, wt, b, pad)
        assert out.shape == ref.shape, (out.shape, ref.shape)
        err = float(jnp.max(jnp.abs(out - ref)))
        # bf16 activation/weight streaming with f32 accumulation
        assert err < 3e-2, err

    k1, k2, k3 = jax.random.split(root, 3)
    # BasicConv2D(in_dim=4, out_dim=8, kernel_size=3, padding=1) on a 2x4x16x16 input
    run_case(k1, 2, 4, 16, 16, 8, 3, 1)
    # padding=0: non-tile-multiple output rows + real (non-zero) halo rows
    run_case(k2, 2, 4, 16, 16, 8, 3, 0)
    # N=1, W a lane multiple: several row tiles per image (megacore-friendly grid)
    run_case(k3, 1, 3, 16, 128, 8, 3, 0)
    print("KERNEL_OK")
</pallas_src>

<mosaic_0001>
module attributes {stable_mosaic.version = 11 : i64} {
  func.func @_conv_relu_kernel(%arg0: i32, %arg1: i32, %arg2: memref<8x36xbf16, #tpu.memory_space<vmem>>, %arg3: memref<8x1xf32, #tpu.memory_space<vmem>>, %arg4: memref<1x4x1152xbf16, #tpu.memory_space<vmem>>, %arg5: memref<1x1x4x36xbf16, #tpu.memory_space<vmem>>, %arg6: memref<1x8x1152xf32, #tpu.memory_space<vmem>>, %arg7: memref<4x1316xbf16, #tpu.memory_space<vmem>>, %arg8: memref<36x1152xbf16, #tpu.memory_space<vmem>>) attributes {dimension_semantics = [#tpu.dimension_semantics<parallel>, #tpu.dimension_semantics<parallel>], iteration_bounds = array<i64: 2, 1>, scalar_prefetch = 0 : i64, scratch_operands = 2 : i64, tpu.core_type = #tpu.core_type<tc>, window_params = [{pipeline_mode = #tpu.pipeline_mode<synchronous>, transform_indices = @transform_0, window_bounds = array<i64: 8, 36>}, {pipeline_mode = #tpu.pipeline_mode<synchronous>, transform_indices = @transform_1, window_bounds = array<i64: 8, 1>}, {transform_indices = @transform_2, window_bounds = array<i64: 1, 4, 1152>}, {transform_indices = @transform_3, window_bounds = array<i64: 1, 1, 4, 36>}, {transform_indices = @transform_4, window_bounds = array<i64: 1, 8, 1152>}]} {
    %c0 = arith.constant 0 : index
    %c0_0 = arith.constant 0 : index
    %c0_1 = arith.constant 0 : index
    %0 = vector.load %arg4[%c0, %c0_0, %c0_1] : memref<1x4x1152xbf16, #tpu.memory_space<vmem>>, vector<1x4x1152xbf16>
    %1 = vector.shape_cast %0 : vector<1x4x1152xbf16> to vector<4x1152xbf16>
    %c0_2 = arith.constant 0 : index
    %c0_3 = arith.constant 0 : index
    %2 = vector.load %arg7[%c0_2, %c0_3] : memref<4x1316xbf16, #tpu.memory_space<vmem>>, vector<4x1152xbf16>
    tpu.vector_store %arg7[%c0_2, %c0_3], %1 {strides = array<i32>} : memref<4x1316xbf16, #tpu.memory_space<vmem>>, vector<4x1152xbf16>,
    %c0_4 = arith.constant 0 : index
    %c0_5 = arith.constant 0 : index
    %c0_6 = arith.constant 0 : index
    %c0_7 = arith.constant 0 : index
    %3 = vector.load %arg5[%c0_4, %c0_5, %c0_6, %c0_7] : memref<1x1x4x36xbf16, #tpu.memory_space<vmem>>, vector<1x1x4x36xbf16>
    %4 = vector.shape_cast %3 : vector<1x1x4x36xbf16> to vector<4x36xbf16>
    %c0_8 = arith.constant 0 : index
    %c1152 = arith.constant 1152 : index
    %5 = vector.load %arg7[%c0_8, %c1152] : memref<4x1316xbf16, #tpu.memory_space<vmem>>, vector<4x36xbf16>
    tpu.vector_store %arg7[%c0_8, %c1152], %4 {strides = array<i32>} : memref<4x1316xbf16, #tpu.memory_space<vmem>>, vector<4x36xbf16>,
    %cst = arith.constant 0.000000e+00 : bf16
    %6 = vector.broadcast %cst : bf16 to vector<4x128xbf16>
    %c0_9 = arith.constant 0 : index
    %c1188 = arith.constant 1188 : index
    %7 = vector.load %arg7[%c0_9, %c1188] : memref<4x1316xbf16, #tpu.memory_space<vmem>>, vector<4x128xbf16>
    tpu.vector_store %arg7[%c0_9, %c1188], %6 {strides = array<i32>} : memref<4x1316xbf16, #tpu.memory_space<vmem>>, vector<4x128xbf16>,
    %c0_10 = arith.constant 0 : index
    %c0_11 = arith.constant 0 : index
    %8 = vector.load %arg7[%c0_10, %c0_11] : memref<4x1316xbf16, #tpu.memory_space<vmem>>, vector<4x1152xbf16>
    %c0_12 = arith.constant 0 : index
    %c0_13 = arith.constant 0 : index
    %9 = vector.load %arg8[%c0_12, %c0_13] : memref<36x1152xbf16, #tpu.memory_space<vmem>>, vector<4x1152xbf16>
    tpu.vector_store %arg8[%c0_12, %c0_13], %8 {strides = array<i32>} : memref<36x1152xbf16, #tpu.memory_space<vmem>>, vector<4x1152xbf16>,
    %c0_14 = arith.constant 0 : index
    %c1 = arith.constant 1 : index
    %10 = vector.load %arg7[%c0_14, %c1] : memref<4x1316xbf16, #tpu.memory_space<vmem>>, vector<4x1152xbf16>
    %c4 = arith.constant 4 : index
    %c0_15 = arith.constant 0 : index
    %11 = vector.load %arg8[%c4, %c0_15] : memref<36x1152xbf16, #tpu.memory_space<vmem>>, vector<4x1152xbf16>
    tpu.vector_store %arg8[%c4, %c0_15], %10 {strides = array<i32>} : memref<36x1152xbf16, #tpu.memory_space<vmem>>, vector<4x1152xbf16>,
    %c0_16 = arith.constant 0 : index
    %c2 = arith.constant 2 : index
    %12 = vector.load %arg7[%c0_16, %c2] : memref<4x1316xbf16, #tpu.memory_space<vmem>>, vector<4x1152xbf16>
    %c8 = arith.constant 8 : index
    %c0_17 = arith.constant 0 : index
    %13 = vector.load %arg8[%c8, %c0_17] : memref<36x1152xbf16, #tpu.memory_space<vmem>>, vector<4x1152xbf16>
    tpu.vector_store %arg8[%c8, %c0_17], %12 {strides = array<i32>} : memref<36x1152xbf16, #tpu.memory_space<vmem>>, vector<4x1152xbf16>,
    %c0_18 = arith.constant 0 : index
    %c18 = arith.constant 18 : index
    %14 = vector.load %arg7[%c0_18, %c18] : memref<4x1316xbf16, #tpu.memory_space<vmem>>, vector<4x1152xbf16>
    %c12 = arith.constant 12 : index
    %c0_19 = arith.constant 0 : index
    %15 = vector.load %arg8[%c12, %c0_19] : memref<36x1152xbf16, #tpu.memory_space<vmem>>, vector<4x1152xbf16>
    tpu.vector_store %arg8[%c12, %c0_19], %14 {strides = array<i32>} : memref<36x1152xbf16, #tpu.memory_space<vmem>>, vector<4x1152xbf16>,
    %c0_20 = arith.constant 0 : index
    %c19 = arith.constant 19 : index
    %16 = vector.load %arg7[%c0_20, %c19] : memref<4x1316xbf16, #tpu.memory_space<vmem>>, vector<4x1152xbf16>
    %c16 = arith.constant 16 : index
    %c0_21 = arith.constant 0 : index
    %17 = vector.load %arg8[%c16, %c0_21] : memref<36x1152xbf16, #tpu.memory_space<vmem>>, vector<4x1152xbf16>
    tpu.vector_store %arg8[%c16, %c0_21], %16 {strides = array<i32>} : memref<36x1152xbf16, #tpu.memory_space<vmem>>, vector<4x1152xbf16>,
    %c0_22 = arith.constant 0 : index
    %c20 = arith.constant 20 : index
    %18 = vector.load %arg7[%c0_22, %c20] : memref<4x1316xbf16, #tpu.memory_space<vmem>>, vector<4x1152xbf16>
    %c20_23 = arith.constant 20 : index
    %c0_24 = arith.constant 0 : index
    %19 = vector.load %arg8[%c20_23, %c0_24] : memref<36x1152xbf16, #tpu.memory_space<vmem>>, vector<4x1152xbf16>
    tpu.vector_store %arg8[%c20_23, %c0_24], %18 {strides = array<i32>} : memref<36x1152xbf16, #tpu.memory_space<vmem>>, vector<4x1152xbf16>,
    %c0_25 = arith.constant 0 : index
    %c36 = arith.constant 36 : index
    %20 = vector.load %arg7[%c0_25, %c36] : memref<4x1316xbf16, #tpu.memory_space<vmem>>, vector<4x1152xbf16>
    %c24 = arith.constant 24 : index
    %c0_26 = arith.constant 0 : index
    %21 = vector.load %arg8[%c24, %c0_26] : memref<36x1152xbf16, #tpu.memory_space<vmem>>, vector<4x1152xbf16>
    tpu.vector_store %arg8[%c24, %c0_26], %20 {strides = array<i32>} : memref<36x1152xbf16, #tpu.memory_space<vmem>>, vector<4x1152xbf16>,
    %c0_27 = arith.constant 0 : index
    %c37 = arith.constant 37 : index
    %22 = vector.load %arg7[%c0_27, %c37] : memref<4x1316xbf16, #tpu.memory_space<vmem>>, vector<4x1152xbf16>
    %c28 = arith.constant 28 : index
    %c0_28 = arith.constant 0 : index
    %23 = vector.load %arg8[%c28, %c0_28] : memref<36x1152xbf16, #tpu.memory_space<vmem>>, vector<4x1152xbf16>
    tpu.vector_store %arg8[%c28, %c0_28], %22 {strides = array<i32>} : memref<36x1152xbf16, #tpu.memory_space<vmem>>, vector<4x1152xbf16>,
    %c0_29 = arith.constant 0 : index
    %c38 = arith.constant 38 : index
    %24 = vector.load %arg7[%c0_29, %c38] : memref<4x1316xbf16, #tpu.memory_space<vmem>>, vector<4x1152xbf16>
    %c32 = arith.constant 32 : index
    %c0_30 = arith.constant 0 : index
    %25 = vector.load %arg8[%c32, %c0_30] : memref<36x1152xbf16, #tpu.memory_space<vmem>>, vector<4x1152xbf16>
    tpu.vector_store %arg8[%c32, %c0_30], %24 {strides = array<i32>} : memref<36x1152xbf16, #tpu.memory_space<vmem>>, vector<4x1152xbf16>,
    %c0_31 = arith.constant 0 : index
    %c0_32 = arith.constant 0 : index
    %26 = vector.load %arg2[%c0_31, %c0_32] : memref<8x36xbf16, #tpu.memory_space<vmem>>, vector<8x36xbf16>
    %c0_33 = arith.constant 0 : index
    %c0_34 = arith.constant 0 : index
    %27 = vector.load %arg8[%c0_33, %c0_34] : memref<36x1152xbf16, #tpu.memory_space<vmem>>, vector<36x1152xbf16>
    %cst_35 = arith.constant dense<0.000000e+00> : vector<8x1152xf32>
    %28 = tpu.matmul %26, %27, %cst_35 {dimension_numbers = #tpu.dot_dimension_numbers<[1], [0], [0], [1], [0, 0, 1, 1], [], []>} : vector<8x36xbf16>, vector<36x1152xbf16>, vector<8x1152xf32> -> vector<8x1152xf32>
    %c0_36 = arith.constant 0 : index
    %c0_37 = arith.constant 0 : index
    %29 = vector.load %arg3[%c0_36, %c0_37] : memref<8x1xf32, #tpu.memory_space<vmem>>, vector<8x1xf32>
    %30 = vector.broadcast %29 : vector<8x1xf32> to vector<8x1152xf32>
    %31 = arith.addf %28, %30 : vector<8x1152xf32>
    %cst_38 = arith.constant 0.000000e+00 : f32
    %32 = vector.broadcast %cst_38 : f32 to vector<8x1152xf32>
    %33 = arith.maximumf %31, %32 : vector<8x1152xf32>
    %c0_39 = arith.constant 0 : index
    %c0_40 = arith.constant 0 : index
    %c0_41 = arith.constant 0 : index
    %34 = vector.load %arg6[%c0_39, %c0_40, %c0_41] : memref<1x8x1152xf32, #tpu.memory_space<vmem>>, vector<1x8x1152xf32>
    %35 = vector.shape_cast %34 : vector<1x8x1152xf32> to vector<8x1152xf32>
    %36 = vector.shape_cast %33 : vector<8x1152xf32> to vector<1x8x1152xf32>
    tpu.vector_store %arg6[%c0_39, %c0_40, %c0_41], %36 {strides = array<i32>} : memref<1x8x1152xf32, #tpu.memory_space<vmem>>, vector<1x8x1152xf32>,
    return
  }
  func.func @transform_0(%arg0: i32, %arg1: i32) -> (i32, i32) {
    %c0_i32 = arith.constant 0 : i32
    %c0_i32_0 = arith.constant 0 : i32
    %c0_i32_1 = arith.constant 0 : i32
    return %c0_i32, %c0_i32_0 : i32, i32
  }
  func.func @transform_1(%arg0: i32, %arg1: i32) -> (i32, i32) {
    %c0_i32 = arith.constant 0 : i32
    %c0_i32_0 = arith.constant 0 : i32
    %c0_i32_1 = arith.constant 0 : i32
    return %c0_i32, %c0_i32_0 : i32, i32
  }
  func.func @transform_2(%arg0: i32, %arg1: i32) -> (i32, i32, i32) {
    %c0_i32 = arith.constant 0 : i32
    %c0_i32_0 = arith.constant 0 : i32
    return %arg0, %c0_i32, %arg1 : i32, i32, i32
  }
  func.func @transform_3(%arg0: i32, %arg1: i32) -> (i32, i32, i32, i32) {
    %c0_i32 = arith.constant 0 : i32
    %c0_i32_0 = arith.constant 0 : i32
    %c0_i32_1 = arith.constant 0 : i32
    return %arg0, %arg1, %c0_i32, %c0_i32_0 : i32, i32, i32, i32
  }
  func.func @transform_4(%arg0: i32, %arg1: i32) -> (i32, i32, i32) {
    %c0_i32 = arith.constant 0 : i32
    %c0_i32_0 = arith.constant 0 : i32
    return %arg0, %c0_i32, %arg1 : i32, i32, i32
  }
}

</mosaic_0001>

<bundles_post_ra>
// kernel: basic_conv2d_relu.1
= control target key start
LH: loop header
LB: loop body
LE: loop exit
PB: predicated region body
PF: predicated region fallthrough
CT: control target
= control target key end

     0   :  { %s1696_s15 = smov 0   ;;  %s1698_s16 = smov 0   ;;  %s2035_s0 = inlined_call_operand.vmem [shape: bf16[8,36], index: 0, kind: input, shape index: {}]   ;;  %s2036_s1 = inlined_call_operand.vmem [shape: f32[8,1], index: 1, kind: input, shape index: {}]   ;;  %s2037_s2 = inlined_call_operand.vmem [shape: bf16[2,4,1188], index: 2, kind: input, shape index: {}]   ;;  %s2038_s3 = inlined_call_operand.vmem [shape: bf16[2,1,4,36], index: 3, kind: input, shape index: {}]   ;;  %s2039_s4 = inlined_call_operand.vmem [shape: f32[2,8,1152], index: 4, kind: output, shape index: {}]  }
   0x1   :  { %s1700_s17 = smov 0  }
   0x2 LB: > { %s26_s18 = sadd.s32 1, %s1653_s16  ;;  %p1488_p0 = scmp.ge.s32.totalorder %s1657_s17, 1  ;;  %s1657_s17 = sphi %s1700_s17, %s14_s17   ;;  %s1653_s16 = sphi %s1698_s16, %s2043_s16   ;;  %s1649_s15 = sphi %s1696_s15, %s2042_s15  }
   0x3   : > { %p28_p1 = scmp.ge.s32.totalorder %s26_s18, 2  ;;  %p205_p2 = scmp.lt.s32.totalorder %s1657_s17, 3 }
   0x5   : > { %s2045_s18 = smov (%p28_p1, %s26_s18), 0  ;;  %p206_p3 = pnand %p1488_p0, %p205_p2 }
   0x6   : > { %p255_p4 = scmp.lt.s32.totalorder (!%p206_p3), %s1649_s15, 1  ;;  %s1661_s27 = smov (!%p206_p3), 90  }
   0x7   : > { %209 = sbr.rel (%p206_p3) target bundleno = 431 (0x1af), region = 36  ;;  %s1662_s28 = smov (!%p206_p3), 109  }
   0x8   : > { %s1663_s29 = smov (!%p206_p3), 92   ;;  %s1664_s30 = smov (!%p206_p3), 108  }
   0x9   : > { %s1665_s5 = smov (!%p206_p3), 91   ;;  %s1666_s6 = smov (!%p206_p3), 127  }
   0xa   : > { %s1667_s7 = smov (!%p206_p3), 126   ;;  %s1668_s8 = smov (!%p206_p3), 110  }
   0xc   : > { %v362_v0 = vlaneseq  ;;  %v1659_v1 = vmov 1983009808   ;;  %s2047_s15 = smov (!%p255_p4, %s1649_s15), 1  ;;  %v1660_v4 = vmov 0   ;;  %vm295_vm0 = vcmask 1041696   ;;  %v1007_v32 = vld [vmem:[%s2036_s1] sm:$0xff] }
   0xd   : > { %v360_v2 = vunpack.c.l.s4 %v1659_v1  ;;  %1192 = vmatprep.mubr.bf16.mxu0 %v1660_v4  ;;  %1233 = vmatprep.mubr.bf16.mxu1 %v1660_v4  ;;  %vm296_vm1 = vcmask 289794   ;;  %s1553_s19 = smul.u32 20, %s2047_s15  ;;  %s1490_s23 = sshll.u32 %s2047_s15, 1  ;;  %vm293_vm2 = vcmask 287744   ;;  %vm411_vm4 = vcmask 1043456  }
   0xe   : > { %v363_v3 = vshrl.u32 %v362_v0, 7  ;;  %1591 = vset.pattern.permute.xlu0 %v1660_v4  ;;  %vm1726_vm3 = vmor %vm296_vm1, %vm295_vm0  ;;  %s274_s26 = scalar_lea.vmem %s2038_s3, %s1490_s23  ;;  %vm962_vm5 = vcmask 736256   ;;  %vm727_vm6 = vcmask 883712   ;;  %vm884_vm7 = vcmask 744448   ;;  %s1554_s13 = smul.u32 72, %s2047_s15 }
   0xf   : > { %v361_v5 = vunpack.c.0.s8 %v360_v2  ;;  %s262_s22 = scalar_lea.vmem %s2037_s2, %s1553_s19  ;;  %v292_v14 = vld [vmem:[%s274_s26] sm:$0x3]  ;;  %vm648_vm8 = vcmask 891904   ;;  %vm805_vm9 = vcmask 752640   ;;  %vm413_vm10 = vcmask 1039360  }
  0x10   : > { %v286_v8 = vld [vmem:[%s262_s22] sm:$0xff]  ;;  %v287_v9 = vld [vmem:[%s262_s22 + $0x8] sm:$0xff]  ;;  %v288_v10 = vld [vmem:[%s262_s22 + $0x10] sm:$0x3]  ;;  %294 = vst.msk [vmem:[#allocation2 + $0x12] sm:$0x3] %vm293_vm2, %v292_v14  ;;  %s2015_s20 = scalar_lea.vmem %s2039_s4, %s1554_s13 }
  0x11   : > { %v1720_v6 = vsub.s32 %v361_v5, %v363_v3  ;;  %v909_v12 = vcombine.high %v286_v8, %v286_v8  ;;  %v924_v13 = vcombine.high %v287_v9, %v287_v9  ;;  %291 = vst [vmem:[#allocation2 + $0x10] sm:$0x3] %v288_v10  ;;  %1493 = vst.sshfl [vmem:[#allocation3] sm:$0xf pattern:$0x76325410] %v286_v8 }
  0x12   : > { %1495 = vst.sshfl [vmem:[#allocation3 + $0x10] sm:$0xf pattern:$0x76325410] %v287_v9  ;;  %298 = vst.msk [vmem:[#allocation2 + $0x12] sm:$0xf] %vm1726_vm3, %v1660_v4  ;;  %v673_v16 = vcombine.low %v286_v8, %v286_v8  ;;  %v688_v20 = vcombine.low %v287_v9, %v287_v9 }
  0x13   : > { %v916_v11 = vrot.slane %v286_v8, %v1720_v6  ;;  %1494 = vst.sshfl [vmem:[#allocation3 + $0x8] sm:$0xf pattern:$0x76325410] %v909_v12  ;;  %v923_v15 = vrot.slane %v909_v12, %v1720_v6  ;;  %v938_v18 = vrot.slane %v924_v13, %v1720_v6  ;;  %v931_v19 = vrot.slane %v287_v9, %v1720_v6 }
  0x14   : > { %1496 = vst.sshfl [vmem:[#allocation3 + $0x18] sm:$0xf pattern:$0x76325410] %v924_v13  ;;  %v680_v17 = vrot.slane %v673_v16, %v1720_v6  ;;  %v695_v21 = vrot.slane %v688_v20, %v1720_v6  ;;  %vm1132_vm11 = vcmask 1041408   ;;  %vm491_vm12 = vcmask 1031168  }
  0x15   : > { %946 = vrot.lane.b32.xlu0 %v916_v11, %s1661_s27  ;;  %632 = vrot.lane.b32.xlu1 %v916_v11, %s1662_s28  ;;  %vm570_vm13 = vcmask 900096   ;;  %vm1128_vm14 = vcmask 293888   ;;  %vm1670_vm15 = vmmov 0  }
  0x18   : > { %v1596_v22 = vld [vmem:[#allocation2 + $0x10] ss:$0 sps:$4 sm:$0xff]  }
  0x19   : > { %789 = vrot.lane.b32.xlu0 %v916_v11, %s1663_s29  ;;  %713 = vrot.lane.b32.xlu1 %v916_v11, %s1664_s30  ;;  %v1498_v23 = vld.sshfl [vmem:[#allocation2 + $0x10] sm:$0x33 pattern:$0x76325410]  ;;  %v710_v25 = vrot.slane %v1596_v22, %v1720_v6 }
  0x1a   : > { %v1492_v24 = vld.sshfl [vmem:[#allocation2 + $0x10] sm:$0x3 pattern:$0x76325410] }
  0x1b   : > { %351 = vst [vmem:[#allocation3 + $0x20] sm:$0x3] %v1492_v24  ;;  %v1597_v26 = vld [vmem:[#allocation2 + $0x10] ss:$0 sps:$4 sm:$0xff]  }
  0x1c   : > { %v1598_v27 = vld [vmem:[#allocation2 + $0x10] ss:$0 sps:$4 sm:$0xff]   ;;  %v395_v28 = vrot.slane %v1597_v26, %v1720_v6 }
  0x1d   : > { %948 = vrot.lane.b32.xlu0 %v923_v15, %s1661_s27  ;;  %870 = vrot.lane.b32.xlu1 %v916_v11, %s1665_s5  ;;  %v867_v29 = vrot.slane %v1598_v27, %v1720_v6  ;;  %v1599_v30 = vld [vmem:[#allocation2 + $0x10] ss:$0 sps:$4 sm:$0xff]  }
  0x1e   : > { %v553_v31 = vrot.slane %v1599_v30, %v1720_v6 }
  0x21   : > { %711 = vrot.lane.b32.xlu0 %v680_v17, %s1664_s30  ;;  %398 = vrot.lane.b32.xlu1 %v916_v11, %s1666_s6 }
  0x25   : > { %868 = vrot.lane.b32.xlu0 %v680_v17, %s1665_s5  ;;  %634 = vrot.lane.b32.xlu1 %v923_v15, %s1662_s28 }
  0x29   : > { %791 = vrot.lane.b32.xlu1 %v923_v15, %s1663_s29  ;;  %396 = vrot.lane.b32.xlu0 %v680_v17, %s1666_s6 }
  0x2d   : > { %477 = vrot.lane.b32.xlu1 %v923_v15, %s1667_s7  ;;  %475 = vrot.lane.b32.xlu0 %v916_v11, %s1667_s7 }
  0x31   : > { %556 = vrot.lane.b32.xlu1 %v916_v11, %s1668_s8  ;;  %554 = vrot.lane.b32.xlu0 %v680_v17, %s1668_s8 }
  0x35   : > { %952 = vrot.lane.b32.xlu1 %v938_v18, %s1661_s27  ;;  %950 = vrot.lane.b32.xlu0 %v931_v19, %s1661_s27 }
  0x39   : > { %715 = vrot.lane.b32.xlu1 %v695_v21, %s1664_s30  ;;  %636 = vrot.lane.b32.xlu0 %v931_v19, %s1662_s28 }
  0x3d   : > { %872 = vrot.lane.b32.xlu1 %v695_v21, %s1665_s5  ;;  %793 = vrot.lane.b32.xlu0 %v931_v19, %s1663_s29 }
  0x41   : > { %717 = vrot.lane.b32.xlu1 %v931_v19, %s1664_s30  ;;  %638 = vrot.lane.b32.xlu0 %v938_v18, %s1662_s28 }
  0x45   : > { %874 = vrot.lane.b32.xlu1 %v931_v19, %s1665_s5  ;;  %795 = vrot.lane.b32.xlu0 %v938_v18, %s1663_s29 }
  0x49   : > { %479 = vrot.lane.b32.xlu1 %v931_v19, %s1667_s7  ;;  %400 = vrot.lane.b32.xlu0 %v695_v21, %s1666_s6 }
  0x4d   : > { %402 = vrot.lane.b32.xlu1 %v931_v19, %s1666_s6  ;;  %558 = vrot.lane.b32.xlu0 %v695_v21, %s1668_s8 }
  0x51   : > { %560 = vrot.lane.b32.xlu1 %v931_v19, %s1668_s8  ;;  %481 = vrot.lane.b32.xlu0 %v938_v18, %s1667_s7 }
  0x55   : > { %640 = vrot.lane.b32.xlu1 %v1498_v23, %s1662_s28  ;;  %954 = vrot.lane.b32.xlu0 %v1498_v23, %s1661_s27 }
  0x59   : > { %797 = vrot.lane.b32.xlu1 %v1498_v23, %s1663_s29  ;;  %719 = vrot.lane.b32.xlu0 %v710_v25, %s1664_s30 }
  0x5d   : > { %404 = vrot.lane.b32.xlu1 %v395_v28, %s1666_s6  ;;  %876 = vrot.lane.b32.xlu0 %v867_v29, %s1665_s5 }
  0x61   : > { %562 = vrot.lane.b32.xlu1 %v553_v31, %s1668_s8  ;;  %483 = vrot.lane.b32.xlu0 %v1498_v23, %s1667_s7 }
  0x65   : > { %1010 = vperm.xlu0 %1591, %v1007_v32  }
  0x87   : > { %v947_v33 = vpop.permute.xlu0 %946  ;;  %v633_v34 = vpop.permute.xlu1 %632 }
  0x88   : > { %v956_v39 = vrot.slane %v947_v33, 4  ;;  %v642_v51 = vrot.slane %v633_v34, 4 }
  0x8b   : > { %v790_v35 = vpop.permute.xlu0 %789  ;;  %v1789_v36 = vpop.permute.xlu1 %713 }
  0x8c   : > { %v722_v45 = vrot.slane %v1789_v36, 4  ;;  %v799_v57 = vrot.slane %v790_v35, 4 }
  0x8f   : > { %v1791_v37 = vpop.permute.xlu0 %948  ;;  %v1793_v38 = vpop.permute.xlu1 %870 }
  0x90   : > { %v957_v40 = vrot.slane %v1791_v37, 4  ;;  %v879_v52 = vrot.slane %v1793_v38, 4 }
  0x92   : > { %v961_v41 = vsel %vm411_vm4, %v956_v39, %v957_v40 }
  0x93   : > { %v963_v42 = vsel %vm962_vm5, %v947_v33, %v961_v41  ;;  %v712_v43 = vpop.permute.xlu0 %711  ;;  %v1800_v44 = vpop.permute.xlu1 %398 }
  0x94   : > { %976 = vst [vmem:[#allocation3 + $0x90] sm:$0x33] %v963_v42  ;;  %v721_v46 = vrot.slane %v712_v43, 4  ;;  %v407_v58 = vrot.slane %v1800_v44, 4 }
  0x96   : > { %v726_v47 = vsel %vm411_vm4, %v721_v46, %v722_v45 }
  0x97   : > { %v728_v48 = vsel %vm727_vm6, %v712_v43, %v726_v47  ;;  %v869_v49 = vpop.permute.xlu0 %868  ;;  %v1807_v50 = vpop.permute.xlu1 %634 }
  0x98   : > { %741 = vst [vmem:[#allocation3 + $0x48] sm:$0xcc] %v728_v48  ;;  %v878_v53 = vrot.slane %v869_v49, 4  ;;  %v643_v54 = vrot.slane %v1807_v50, 4 }
  0x9a   : > { %v883_v55 = vsel %vm411_vm4, %v878_v53, %v879_v52  ;;  %v647_v56 = vsel %vm411_vm4, %v642_v51, %v643_v54 }
  0x9b   : > { %v885_v59 = vsel %vm884_vm7, %v869_v49, %v883_v55  ;;  %v649_v60 = vsel %vm648_vm8, %v633_v34, %v647_v56  ;;  %v1820_v61 = vpop.permute.xlu1 %791  ;;  %v397_v62 = vpop.permute.xlu0 %396  ;;  %v1002_v63 = vld [vmem:[#allocation3 + $0x90] sm:$0x33] }
  0x9c   : > { %898 = vst [vmem:[#allocation3 + $0x6c] sm:$0xcc] %v885_v59  ;;  %662 = vst [vmem:[#allocation3 + $0x48] sm:$0x33] %v649_v60  ;;  %v800_v0 = vrot.slane %v1820_v61, 4  ;;  %v406_v1 = vrot.slane %v397_v62, 4  ;;  %v1520_v2 = vcombine.high %v1002_v63, %v1002_v63  ;;  %v1519_v3 = vcombine.low %v1002_v63, %v1002_v63 }
  0x9e   : > { %v804_v5 = vsel %vm411_vm4, %v799_v57, %v800_v0  ;;  %v412_v6 = vsel %vm411_vm4, %v406_v1, %v407_v58  ;;  %1528 = vmatprep.subr.msk.bf16.mxu0 %vm1132_vm11, %v1520_v2  ;;  %v1134_v7 = vsel %vm1132_vm11, %v1519_v3, 0 }
  0x9f   : > { %v806_v8 = vsel %vm805_vm9, %v790_v35, %v804_v5  ;;  %v414_v9 = vsel %vm413_vm10, %v397_v62, %v412_v6  ;;  %1171 = vmatpush1.bf16.msra.mxu0 %v1134_v7  ;;  %v1831_v10 = vpop.permute.xlu1 %477  ;;  %v476_v11 = vpop.permute.xlu0 %475 }
  0xa0   : > { %819 = vst [vmem:[#allocation3 + $0x6c] sm:$0x33] %v806_v8  ;;  %427 = vst [vmem:[#allocation3] sm:$0xcc] %v414_v9  ;;  %v486_v12 = vrot.slane %v1831_v10, 4  ;;  %v485_v13 = vrot.slane %v476_v11, 4 }
  0xa2   : > { %v490_v14 = vsel %vm411_vm4, %v485_v13, %v486_v12 }
  0xa3   : > { %v492_v15 = vsel %vm491_vm12, %v476_v11, %v490_v14  ;;  %v1838_v16 = vpop.permute.xlu1 %556  ;;  %v555_v17 = vpop.permute.xlu0 %554 }
  0xa4   : > { %505 = vst [vmem:[#allocation3 + $0x24] sm:$0x33] %v492_v15  ;;  %v565_v18 = vrot.slane %v1838_v16, 4  ;;  %v564_v19 = vrot.slane %v555_v17, 4 }
  0xa6   : > { %v569_v20 = vsel %vm411_vm4, %v564_v19, %v565_v18 }
  0xa7   : > { %v571_v21 = vsel %vm570_vm13, %v555_v17, %v569_v20  ;;  %v1845_v22 = vpop.permute.xlu1 %952  ;;  %v951_v23 = vpop.permute.xlu0 %950  ;;  %v1602_v24 = vld [vmem:[#allocation3 + $0x4c] ss:$36 sps:$4 sm:$0xff]  }
  0xa8   : > { %v1604_v25 = vld [vmem:[#allocation3 + $0x48] ss:$36 sps:$4 sm:$0xff]   ;;  %584 = vst [vmem:[#allocation3 + $0x24] sm:$0xcc] %v571_v21  ;;  %v959_v26 = vrot.slane %v1845_v22, 4  ;;  %v958_v27 = vrot.slane %v951_v23, 4  ;;  %1172 = vmatprep.subr.bf16.mxu0 %v1602_v24 }
  0xa9   : > { %1173 = vmatpush1.bf16.msra.mxu0 %v1604_v25 }
  0xaa   : > { %v964_v28 = vsel %vm411_vm4, %v957_v40, %v958_v27  ;;  %v966_v29 = vsel %vm411_vm4, %v958_v27, %v959_v26 }
  0xab   : > { %v965_v30 = vsel %vm962_vm5, %v1791_v37, %v964_v28  ;;  %v967_v31 = vsel %vm962_vm5, %v951_v23, %v966_v29  ;;  %v716_v32 = vpop.permute.xlu1 %715  ;;  %v637_v33 = vpop.permute.xlu0 %636 }
  0xac   : > { %977 = vst [vmem:[#allocation3 + $0x98] sm:$0x33] %v965_v30  ;;  %978 = vst [vmem:[#allocation3 + $0xa0] sm:$0x33] %v967_v31  ;;  %v723_v34 = vrot.slane %v716_v32, 4  ;;  %v644_v35 = vrot.slane %v637_v33, 4 }
  0xae   : > { %v729_v39 = vsel %vm411_vm4, %v722_v45, %v723_v34  ;;  %v650_v40 = vsel %vm411_vm4, %v643_v54, %v644_v35 }
  0xaf   : > { %v730_v41 = vsel %vm727_vm6, %v1789_v36, %v729_v39  ;;  %v651_v37 = vsel %vm648_vm8, %v1807_v50, %v650_v40  ;;  %v873_v42 = vpop.permute.xlu1 %872  ;;  %v794_v43 = vpop.permute.xlu0 %793  ;;  %v1605_v46 = vld [vmem:[#allocation3 + $0x4] ss:$36 sps:$4 sm:$0xff]  }
  0xb0   : > { %v1607_v47 = vld [vmem:[#allocation3] ss:$36 sps:$4 sm:$0xff]   ;;  %742 = vst [vmem:[#allocation3 + $0x50] sm:$0xcc] %v730_v41  ;;  %663 = vst [vmem:[#allocation3 + $0x50] sm:$0x33] %v651_v37  ;;  %1174 = vmatprep.subr.bf16.mxu0 %v1605_v46 }
  0xb1   : > { %v880_v48 = vrot.slane %v873_v42, 4  ;;  %v801_v49 = vrot.slane %v794_v43, 4  ;;  %1175 = vmatpush1.bf16.msra.mxu0 %v1607_v47  ;;  %v1874_v36 = vld [vmem:[%s2035_s0] sm:$0xf] }
  0xb3   : > { %v886_v45 = vsel %vm411_vm4, %v879_v52, %v880_v48  ;;  %v807_v51 = vsel %vm411_vm4, %v800_v0, %v801_v49  ;;  %v1880_v54 = vpop.permute.xlu1 %717  ;;  %v1882_v55 = vpop.permute.xlu0 %638  ;;  %v1003_v52 = vld [vmem:[#allocation3 + $0x98] sm:$0x33]  ;;  %v1004_v56 = vld [vmem:[#allocation3 + $0xa0] sm:$0x33] }
  0xb4   : > { %v887_v50 = vsel %vm884_vm7, %v1793_v38, %v886_v45  ;;  %v808_v53 = vsel %vm805_vm9, %v1820_v61, %v807_v51  ;;  %v724_v57 = vrot.slane %v1880_v54, 4  ;;  %v645_v59 = vrot.slane %v1882_v55, 4  ;;  %1529 = vmatmul.mubr.msk.bf16.vlgmr.msra.gmra.mxu0 %vm1128_vm14, %v1874_v36 }
  0xb5   : > { %899 = vst [vmem:[#allocation3 + $0x74] sm:$0xcc] %v887_v50  ;;  %820 = vst [vmem:[#allocation3 + $0x74] sm:$0x33] %v808_v53  ;;  %v1522_v60 = vcombine.high %v1003_v52, %v1003_v52  ;;  %v1524_v62 = vcombine.high %v1004_v56, %v1004_v56  ;;  %v1521_v63 = vcombine.low %v1003_v52, %v1003_v52  ;;  %1274 = vmatprep.mubr.bf16.mxu0 %v1660_v4 }
  0xb6   : > { %v1523_v38 = vcombine.low %v1004_v56, %v1004_v56  ;;  %v731_v61 = vsel %vm411_vm4, %v723_v34, %v724_v57  ;;  %v652_v0 = vsel %vm411_vm4, %v644_v35, %v645_v59 }
  0xb7   : > { %1530 = vmatprep.subr.msk.bf16.mxu1 %vm1132_vm11, %v1522_v60  ;;  %1532 = vmatprep.subr.msk.bf16.mxu0 %vm1132_vm11, %v1524_v62  ;;  %v732_v1 = vsel %vm727_vm6, %v716_v32, %v731_v61  ;;  %v653_v2 = vsel %vm648_vm8, %v637_v33, %v652_v0  ;;  %v1898_v3 = vpop.permute.xlu1 %874  ;;  %v1140_v5 = vsel %vm1132_vm11, %v1521_v63, 0  ;;  %v1901_v6 = vpop.permute.xlu0 %795 }
  0xb8   : > { %v1146_v7 = vsel %vm1132_vm11, %v1523_v38, 0  ;;  %743 = vst [vmem:[#allocation3 + $0x58] sm:$0xcc] %v732_v1  ;;  %664 = vst [vmem:[#allocation3 + $0x58] sm:$0x33] %v653_v2  ;;  %v881_v8 = vrot.slane %v1898_v3, 4  ;;  %1212 = vmatpush1.bf16.msra.mxu1 %v1140_v5 }
  0xb9   : > { %v802_v9 = vrot.slane %v1901_v6, 4  ;;  %1253 = vmatpush1.bf16.msra.mxu0 %v1146_v7 }
  0xba   : > { %v888_v11 = vsel %vm411_vm4, %v880_v48, %v881_v8 }
  0xbb   : > { %v809_v13 = vsel %vm411_vm4, %v801_v49, %v802_v9  ;;  %v889_v14 = vsel %vm884_vm7, %v873_v42, %v888_v11  ;;  %v480_v17 = vpop.permute.xlu1 %479  ;;  %v401_v19 = vpop.permute.xlu0 %400 }
  0xbc   : > { %v810_v15 = vsel %vm805_vm9, %v794_v43, %v809_v13  ;;  %v1612_v20 = vld [vmem:[#allocation3 + $0x54] ss:$36 sps:$4 sm:$0xff]   ;;  %900 = vst [vmem:[#allocation3 + $0x7c] sm:$0xcc] %v889_v14  ;;  %v487_v23 = vrot.slane %v480_v17, 4  ;;  %v408_v24 = vrot.slane %v401_v19, 4 }
  0xbd   : > { %v1614_v21 = vld [vmem:[#allocation3 + $0x50] ss:$36 sps:$4 sm:$0xff]   ;;  %821 = vst [vmem:[#allocation3 + $0x7c] sm:$0x33] %v810_v15  ;;  %1213 = vmatprep.subr.bf16.mxu1 %v1612_v20 }
  0xbe   : > { %v493_v25 = vsel %vm411_vm4, %v486_v12, %v487_v23  ;;  %v415_v27 = vsel %vm411_vm4, %v407_v58, %v408_v24  ;;  %1214 = vmatpush1.bf16.msra.mxu1 %v1614_v21 }
  0xbf   : > { %v494_v28 = vsel %vm491_vm12, %v1831_v10, %v493_v25  ;;  %v416_v29 = vsel %vm413_vm10, %v1800_v44, %v415_v27  ;;  %v1925_v30 = vpop.permute.xlu1 %402  ;;  %v559_v31 = vpop.permute.xlu0 %558  ;;  %v1669_v25 = vmov 0.0  }
  0xc0   : > { %506 = vst [vmem:[#allocation3 + $0x2c] sm:$0x33] %v494_v28  ;;  %428 = vst [vmem:[#allocation3 + $0x8] sm:$0xcc] %v416_v29  ;;  %v409_v32 = vrot.slane %v1925_v30, 4  ;;  %v566_v33 = vrot.slane %v559_v31, 4 }
  0xc2   : > { %v417_v12 = vsel %vm411_vm4, %v408_v24, %v409_v32  ;;  %v572_v58 = vsel %vm411_vm4, %v565_v18, %v566_v33 }
  0xc3   : > { %v418_v10 = vsel %vm413_vm10, %v401_v19, %v417_v12  ;;  %v573_v44 = vsel %vm570_vm13, %v1838_v16, %v572_v58  ;;  %v1937_v34 = vpop.permute.xlu1 %560  ;;  %v1939_v35 = vpop.permute.xlu0 %481 }
  0xc4   : > { %v1615_v39 = vld [vmem:[#allocation3 + $0x58] ss:$36 sps:$4 sm:$0xff]   ;;  %429 = vst [vmem:[#allocation3 + $0x10] sm:$0xcc] %v418_v10  ;;  %585 = vst [vmem:[#allocation3 + $0x2c] sm:$0xcc] %v573_v44 }
  0xc5   : > { %v1617_v40 = vld [vmem:[#allocation3 + $0x5c] ss:$36 sps:$4 sm:$0xff]   ;;  %v567_v41 = vrot.slane %v1937_v34, 4  ;;  %v488_v37 = vrot.slane %v1939_v35, 4 }
  0xc6   : > { %1254 = vmatprep.subr.bf16.mxu0 %v1617_v40 }
  0xc7   : > { %v574_v18 = vsel %vm411_vm4, %v566_v33, %v567_v41  ;;  %v495_v16 = vsel %vm411_vm4, %v487_v23, %v488_v37  ;;  %1255 = vmatpush1.bf16.msra.mxu0 %v1615_v39  ;;  %v641_v46 = vpop.permute.xlu1 %640  ;;  %v955_v47 = vpop.permute.xlu0 %954 }
  0xc8   : > { %v575_v42 = vsel %vm570_vm13, %v559_v31, %v574_v18  ;;  %v496_v43 = vsel %vm491_vm12, %v480_v17, %v495_v16  ;;  %v646_v48 = vrot.slane %v641_v46, 4  ;;  %v960_v49 = vrot.slane %v955_v47, 4 }
  0xc9   : > { %586 = vst [vmem:[#allocation3 + $0x34] sm:$0xcc] %v575_v42  ;;  %507 = vst [vmem:[#allocation3 + $0x34] sm:$0x33] %v496_v43 }
  0xca   : > { %v654_v45 = vsel %vm411_vm4, %v645_v59, %v646_v48  ;;  %v656_v51 = vsel %vm648_vm8, %v641_v46, %v646_v48  ;;  %v968_v50 = vsel %vm411_vm4, %v959_v26, %v960_v49  ;;  %v970_v53 = vsel %vm962_vm5, %v955_v47, %v960_v49 }
  0xcb   : > { %v655_v52 = vsel %vm648_vm8, %v1882_v55, %v654_v45  ;;  %666 = vst [vmem:[#allocation3 + $0x68] sm:$0x3] %v656_v51  ;;  %v969_v56 = vsel %vm962_vm5, %v1845_v22, %v968_v50  ;;  %980 = vst [vmem:[#allocation3 + $0xb0] sm:$0x3] %v970_v53  ;;  %v798_v60 = vpop.permute.xlu1 %797  ;;  %v720_v62 = vpop.permute.xlu0 %719  ;;  %v1618_v63 = vld [vmem:[#allocation3 + $0xc] ss:$36 sps:$4 sm:$0xff]  }
  0xcc   : > { %v1620_v59 = vld [vmem:[#allocation3 + $0x8] ss:$36 sps:$4 sm:$0xff]   ;;  %665 = vst [vmem:[#allocation3 + $0x60] sm:$0x33] %v655_v52  ;;  %979 = vst [vmem:[#allocation3 + $0xa8] sm:$0x33] %v969_v56  ;;  %1215 = vmatprep.subr.bf16.mxu1 %v1618_v63 }
  0xcd   : > { %v803_v38 = vrot.slane %v798_v60, 4  ;;  %v725_v61 = vrot.slane %v720_v62, 4  ;;  %1216 = vmatpush1.bf16.msra.mxu1 %v1620_v59 }
  0xcf   : > { %v811_v26 = vsel %vm411_vm4, %v802_v9, %v803_v38  ;;  %v813_v55 = vsel %vm805_vm9, %v798_v60, %v803_v38  ;;  %v733_v22 = vsel %vm411_vm4, %v724_v57, %v725_v61  ;;  %v735_v0 = vsel %vm727_vm6, %v720_v62, %v725_v61  ;;  %v405_v5 = vpop.permute.xlu1 %404  ;;  %v877_v7 = vpop.permute.xlu0 %876 }
  0xd0   : > { %v812_v1 = vsel %vm805_vm9, %v1901_v6, %v811_v26  ;;  %823 = vst [vmem:[#allocation3 + $0x8c] sm:$0x3] %v813_v55  ;;  %v734_v2 = vsel %vm727_vm6, %v1880_v54, %v733_v22  ;;  %745 = vst [vmem:[#allocation3 + $0x68] sm:$0xc] %v735_v0  ;;  %v1621_v9 = vld [vmem:[#allocation3 + $0x10] ss:$36 sps:$4 sm:$0xff]   ;;  %1531 = vmatmul.mubr.msk.bf16.vlgmr.msra.gmra.mxu1 %vm1128_vm14, %v1874_v36 }
  0xd1   : > { %v1623_v11 = vld [vmem:[#allocation3 + $0x14] ss:$36 sps:$4 sm:$0xff]   ;;  %822 = vst [vmem:[#allocation3 + $0x84] sm:$0x33] %v812_v1  ;;  %744 = vst [vmem:[#allocation3 + $0x60] sm:$0xcc] %v734_v2  ;;  %1315 = vmatprep.mubr.bf16.mxu1 %v1660_v4 }
  0xd2   : > { %v410_v13 = vrot.slane %v405_v5, 4  ;;  %v882_v14 = vrot.slane %v877_v7, 4  ;;  %1256 = vmatprep.subr.bf16.mxu0 %v1623_v11  ;;  %v1626_v17 = vld [vmem:[#allocation3 + $0xb0] ss:$0 sps:$4 sm:$0x33]  }
  0xd3   : > { %1257 = vmatpush1.bf16.msra.mxu0 %v1621_v9  ;;  %v563_v21 = vpop.permute.xlu1 %562  ;;  %v484_v23 = vpop.permute.xlu0 %483  ;;  %v1005_v24 = vld [vmem:[#allocation3 + $0xa8] sm:$0x33] }
  0xd4   : > { %v419_v57 = vsel %vm411_vm4, %v409_v32, %v410_v13  ;;  %v421_v6 = vsel %vm413_vm10, %v405_v5, %v410_v13  ;;  %v890_v54 = vsel %vm411_vm4, %v881_v8, %v882_v14  ;;  %v892_v15 = vsel %vm884_vm7, %v877_v7, %v882_v14  ;;  %1543 = vmatprep.subr.bf16.mxu0 %v1669_v25 }
  0xd5   : > { %v420_v19 = vsel %vm413_vm10, %v1925_v30, %v419_v57  ;;  %431 = vst [vmem:[#allocation3 + $0x20] sm:$0xc] %v421_v6  ;;  %v891_v20 = vsel %vm884_vm7, %v1898_v3, %v890_v54  ;;  %902 = vst [vmem:[#allocation3 + $0x8c] sm:$0xc] %v892_v15  ;;  %v568_v8 = vrot.slane %v563_v21, 4  ;;  %v489_v27 = vrot.slane %v484_v23, 4 }
  0xd6   : > { %430 = vst [vmem:[#allocation3 + $0x18] sm:$0xcc] %v420_v19  ;;  %901 = vst [vmem:[#allocation3 + $0x84] sm:$0xcc] %v891_v20  ;;  %v1526_v28 = vcombine.high %v1005_v24, %v1005_v24  ;;  %v1525_v29 = vcombine.low %v1005_v24, %v1005_v24  ;;  %1533 = vmatmul.mubr.msk.bf16.vlgmr.msra.gmra.mxu0 %vm1128_vm14, %v1874_v36  ;;  %v1158_v30 = vsel %vm1132_vm11, %v1626_v17, 0 }
  0xd7   : > { %v576_v3 = vsel %vm411_vm4, %v567_v41, %v568_v8  ;;  %v578_v31 = vsel %vm570_vm13, %v563_v21, %v568_v8  ;;  %v497_v4 = vsel %vm411_vm4, %v488_v37, %v489_v27  ;;  %v499_v32 = vsel %vm491_vm12, %v484_v23, %v489_v27  ;;  %1544 = vmatpush3.bf16.msra.mxu0 %v1158_v30 }
  0xd8   : > { %1534 = vmatprep.subr.msk.bf16.mxu1 %vm1132_vm11, %v1526_v28  ;;  %v577_v33 = vsel %vm570_vm13, %v1937_v34, %v576_v3  ;;  %588 = vst [vmem:[#allocation3 + $0x44] sm:$0xc] %v578_v31  ;;  %v498_v12 = vsel %vm491_vm12, %v1939_v35, %v497_v4  ;;  %509 = vst [vmem:[#allocation3 + $0x44] sm:$0x3] %v499_v32  ;;  %v1152_v58 = vsel %vm1132_vm11, %v1525_v29, 0  ;;  %1549 = vmatprep.mubr.msk.bf16.mxu0 %vm1670_vm15, %v1669_v25 }
  0xd9   : > { %587 = vst [vmem:[#allocation3 + $0x3c] sm:$0xcc] %v577_v33  ;;  %508 = vst [vmem:[#allocation3 + $0x3c] sm:$0x33] %v498_v12  ;;  %1294 = vmatpush1.bf16.msra.mxu1 %v1152_v58  ;;  %1545 = vmatprep.subr.bf16.mxu0 %v1669_v25 }
  0xdc   : > { %v1627_v10 = vld [vmem:[#allocation3 + $0x68] ss:$36 sps:$4 sm:$0xff]  }
  0xdd   : > { %v1628_v44 = vld [vmem:[#allocation3 + $0x60] ss:$36 sps:$4 sm:$0xff]   ;;  %1546 = vmatpush3.bf16.msra.mxu0 %v1627_v10 }
  0xde   : > { %v1630_v39 = vld [vmem:[#allocation3 + $0x64] ss:$36 sps:$4 sm:$0xff]   ;;  %1547 = vmatprep.subr.bf16.mxu0 %v1669_v25 }
  0xdf   : > { %1295 = vmatprep.subr.bf16.mxu1 %v1630_v39  ;;  %v1631_v34 = vld [vmem:[#allocation3 + $0x20] ss:$36 sps:$4 sm:$0xff]  }
  0xe0   : > { %1296 = vmatpush1.bf16.msra.mxu1 %v1628_v44  ;;  %v1632_v35 = vld [vmem:[#allocation3 + $0x18] ss:$36 sps:$4 sm:$0xff]   ;;  %v1011_v41 = vpop.permute.xlu0 %1010 }
  0xe1   : > { %v1634_v40 = vld [vmem:[#allocation3 + $0x1c] ss:$36 sps:$4 sm:$0xff]   ;;  %1548 = vmatpush3.bf16.msra.mxu0 %v1631_v34 }
  0xe2   : > { %1297 = vmatprep.subr.bf16.mxu1 %v1634_v40 }
  0xe4   : > { %1298 = vmatpush1.bf16.msra.mxu1 %v1632_v35  ;;  %1550 = vmatmul.mubr.msk.bf16.vlgmr.msra.gmra.mxu0 %vm1128_vm14, %v1874_v36 }
  0xe7   : > { %1535 = vmatmul.mubr.msk.bf16.vlgmr.msra.gmra.mxu1 %vm1128_vm14, %v1874_v36 }
 0x174   : > { %v1194_v37 = vpop.f32.mrf.mxu0 }
 0x175   : > { %v1195_v18 = vadd.f32 %v1194_v37, %v1011_v41 }
 0x176   : > { %v1196_v16 = vpop.f32.mrf.mxu0 }
 0x177   : > { %v1197_v42 = vadd.f32 %v1196_v16, %v1011_v41  ;;  %v1364_v43 = vmax.f32 %v1195_v18, 0.0 }
 0x178   : > { %v1198_v46 = vpop.f32.mrf.mxu0 }
 0x179   : > { %v1365_v47 = vmax.f32 %v1197_v42, 0.0  ;;  %1373 = vst [vmem:[%s2015_s20] sm:$0xff] %v1364_v43 }
 0x17a   : > { %v1199_v36 = vpop.f32.mrf.mxu0 }
 0x17b   : > { %1374 = vst [vmem:[%s2015_s20 + $0x8] sm:$0xff] %v1365_v47 }
 0x190   : > { %v1235_v48 = vpop.f32.mrf.mxu1 }
 0x191   : > { %v1236_v49 = vadd.f32 %v1235_v48, %v1011_v41 }
 0x192   : > { %v1237_v45 = vpop.f32.mrf.mxu1 }
 0x193   : > { %v1366_v51 = vmax.f32 %v1236_v49, 0.0  ;;  %v1238_v50 = vadd.f32 %v1237_v45, %v1011_v41 }
 0x194   : > { %v1239_v52 = vpop.f32.mrf.mxu1 }
 0x195   : > { %1375 = vst [vmem:[%s2015_s20 + $0x10] sm:$0xff] %v1366_v51  ;;  %v1367_v60 = vmax.f32 %v1238_v50, 0.0 }
 0x196   : > { %v1276_v53 = vpop.f32.mrf.mxu0  ;;  %v1240_v63 = vpop.f32.mrf.mxu1 }
 0x197   : > { %v1277_v56 = vadd.f32 %v1276_v53, %v1011_v41  ;;  %1376 = vst [vmem:[%s2015_s20 + $0x18] sm:$0xff] %v1367_v60 }
 0x198   : > { %v1278_v62 = vpop.f32.mrf.mxu0 }
 0x199   : > { %v1368_v59 = vmax.f32 %v1277_v56, 0.0  ;;  %v1279_v38 = vadd.f32 %v1278_v62, %v1011_v41 }
 0x19a   : > { %v1280_v61 = vpop.f32.mrf.mxu0 }
 0x19b   : > { %1377 = vst [vmem:[%s2015_s20 + $0x20] sm:$0xff] %v1368_v59  ;;  %v1369_v26 = vmax.f32 %v1279_v38, 0.0 }
 0x19c   : > { %v1281_v55 = vpop.f32.mrf.mxu0 }
 0x19d   : > { %1378 = vst [vmem:[%s2015_s20 + $0x28] sm:$0xff] %v1369_v26 }
 0x1a4   : > { %v1358_v22 = vpop.f32.mrf.mxu0 }
 0x1a5   : > { %v1359_v0 = vadd.f32 %v1358_v22, %v1011_v41 }
 0x1a6   : > { %v1551_v2 = vpop.f32.mrf.mxu0 }
 0x1a7   : > { %v1317_v1 = vpop.f32.mrf.mxu1  ;;  %v1372_v5 = vmax.f32 %v1359_v0, 0.0 }
 0x1a8   : > { %v1318_v7 = vadd.f32 %v1317_v1, %v1011_v41  ;;  %v1361_v11 = vpop.f32.mrf.mxu0 }
 0x1a9   : > { %v1319_v9 = vpop.f32.mrf.mxu1  ;;  %1381 = vst [vmem:[%s2015_s20 + $0x40] sm:$0xff] %v1372_v5 }
 0x1aa   : > { %v1370_v13 = vmax.f32 %v1318_v7, 0.0  ;;  %v1320_v14 = vadd.f32 %v1319_v9, %v1011_v41  ;;  %v1552_v6 = vpop.f32.mrf.mxu0 }
 0x1ab   : > { %v1321_v57 = vpop.f32.mrf.mxu1 }
 0x1ac   : > { %1379 = vst [vmem:[%s2015_s20 + $0x30] sm:$0xff] %v1370_v13  ;;  %v1371_v54 = vmax.f32 %v1320_v14, 0.0 }
 0x1ad   : > { %v1322_v15 = vpop.f32.mrf.mxu1 }
 0x1ae   : > { %1380 = vst [vmem:[%s2015_s20 + $0x38] sm:$0xff] %v1371_v54 }
 0x1af PF: > { %s14_s17 = sadd.s32 1, %s1657_s17   ;;  %s2042_s15 = smov %s1653_s16 }
 0x1b0   : > { %p11_p5 = scmp.ge.s32.totalorder %s14_s17, 4   ;;  %s2043_s16 = smov %s2045_s18 }
 0x1b2   :  { %13 = sbr.rel (!%p11_p5) target bundleno = 2 (0x2), region = 69 }

</bundles_post_ra>
